<compile_context>
chip_gen: v5e
topology: v5e:2x2
jax: 0.10.0
libtpu: 0.0.40
codegen_flags: <defaults>
</compile_context>

<pallas_src>
import functools

import jax
import jax.numpy as jnp
from jax.experimental import pallas as pl
from jax.experimental.pallas import tpu as pltpu


def sap_kernel(feat_ref, mask_ref, w1t_ref, b1_ref, w2_ref, out_ref, *,
               approx_recip):
    """One grid step processes b_blk batch items.

    feat_ref: (b_blk, T, H)  feature tile, native dtype
    mask_ref: (b_blk, T)     additive attention mask (f32)
    w1t_ref:  (H, H)         W1 transposed, in the MXU dtype
    b1_ref:   (1, H)         f32
    w2_ref:   (1, H)         attention projection row (PyTorch W2 is (1, H)), f32
    out_ref:  (b_blk, H)
    """
    b_blk, t, h_dim = feat_ref.shape

    # ---- hidden projection: one (b_blk*T, H) @ (H, H) MXU matmul -----------
    # Reshape is free when T % 8 == 0 (same sublane tiling); otherwise it
    # costs one retiled VMEM copy -- pad T upstream to a multiple of 8 if hot.
    x = feat_ref[...]                                   # native dtype
    x2 = x.reshape(b_blk * t, h_dim)
    if x2.dtype != w1t_ref.dtype:
        # Optional in-kernel down-cast (e.g. f32 feature -> bf16 MXU operand):
        # single-pass bf16 matmul instead of the multi-pass f32 one.
        x2 = x2.astype(w1t_ref.dtype)
    h2 = jnp.dot(x2, w1t_ref[...], preferred_element_type=jnp.float32)
    h2 = jnp.tanh(h2 + b1_ref[...])                     # (b_blk*T, H) f32
    h3 = h2.reshape(b_blk, t, h_dim)                    # (b_blk, T, H)

    # ---- attention logits: VPU multiply + XLU lane reduction over H --------
    # (b2 omitted: constant over T, cancels exactly in the softmax.)
    logits = jnp.sum(h3 * w2_ref[...], axis=-1) + mask_ref[...]    # (b_blk, T)

    # ---- max-stabilized softmax over T; normalization deferred -------------
    m = jnp.max(logits, axis=-1, keepdims=True)
    e = jnp.exp(logits - m)                                        # (b_blk, T)
    denom = jnp.sum(e, axis=-1, keepdims=True)                     # (b_blk, 1)

    # ---- un-normalized pooling over T, then one (b_blk, H) rescale ---------
    acc = jnp.sum(h3 * e[..., None], axis=1)                       # (b_blk, H)
    out_ref[...] = (acc * pl.reciprocal(denom, approx=approx_recip)
                    ).astype(out_ref.dtype)


def _tile_bytes(rows, cols, itemsize):
    """VMEM footprint of a (rows, cols) tile after (8, 128) layout padding."""
    return (-(-rows // 8) * 8) * (-(-cols // 128) * 128) * itemsize


def _choose_batch_block(n, t, h, feat_itemsize,
                        target_tile_bytes=4 << 20,
                        ws_cap_bytes=20 << 20):
    """Batch items per grid step.

    Targets ~4 MiB of feature per step (amortize the ~0.35 us per-step
    overhead; v7x HBM moves 4 MiB in ~1.3 us) while keeping the per-step
    working set (2x native feature tile + ~2x f32 intermediates) under a
    v7x/v5e-friendly cap.  The 2-D mask/out blocks require the batch block
    to be a multiple of 8 (sublane rule) whenever it does not cover the
    whole batch.
    """
    per_item_feat = max(1, t * h * feat_itemsize)
    per_item_f32 = max(1, t * h * 4)
    per_item_ws = 2 * per_item_feat + 2 * per_item_f32

    b = max(1, min(target_tile_bytes // per_item_feat,
                   max(1, ws_cap_bytes // per_item_ws)))
    b = min(b, n)

    if b >= n:
        # Whole batch fits in one step.  Split into >= 2 steps when there is
        # enough work, so the "parallel" grid axis can shard across megacore /
        # v7x's two TensorCores without pushing steps under ~1 MiB each.
        if n >= 2 and n * per_item_feat >= (2 << 20):
            b = -(-n // 2)
            if b < n and b % 8:
                b = min(n, -(-b // 8) * 8)
        return b

    # Partial-batch blocks: sublane-align the batch dim (multiple of 8).
    b = max(8, (b // 8) * 8)
    # TODO(synk): if even 8 items/step exceed the VMEM budget (very large T*H
    # per item), chunk T inside the step (online softmax) instead of growing b.
    return b


def _build_sap_call(N, T, H, out_dtype, b_blk, n_blocks, vmem_limit,
                    single_buffer_weights, approx_recip):
    weight_kw = {}
    if single_buffer_weights:
        # Grid-invariant operands: one VMEM buffer is enough (saves a full
        # second (H, H) buffer -- matters most inside v7x's 64 MiB VMEM).
        weight_kw = dict(pipeline_mode=pl.Buffered(1))

    in_specs = [
        pl.BlockSpec((b_blk, T, H), lambda i: (i, 0, 0)),            # feature
        pl.BlockSpec((b_blk, T), lambda i: (i, 0)),                  # att mask
        pl.BlockSpec((H, H), lambda i: (0, 0), **weight_kw),         # W1^T
        pl.BlockSpec((1, H), lambda i: (0, 0), **weight_kw),         # b1
        pl.BlockSpec((1, H), lambda i: (0, 0), **weight_kw),         # W2 row
    ]
    return pl.pallas_call(
        functools.partial(sap_kernel, approx_recip=approx_recip),
        out_shape=jax.ShapeDtypeStruct((N, H), out_dtype),
        grid_spec=pltpu.PrefetchScalarGridSpec(
            num_scalar_prefetch=0,
            grid=(n_blocks,),
            in_specs=in_specs,
            out_specs=pl.BlockSpec((b_blk, H), lambda i: (i, 0)),
        ),
        compiler_params=pltpu.CompilerParams(
            dimension_semantics=("parallel",),
            vmem_limit_bytes=vmem_limit,
        ),
    )


def sap_forward(feature, att_mask, w1, b1, w2, b2=None, *,
                mxu_dtype=None, single_buffer_weights=True, approx_recip=None):
    """feature: (N, T, H); att_mask: (N, T) additive mask.
    w1: (H, H), b1: (H,)  -- PyTorch Linear(out_dim, out_dim)
    w2: (1, H), b2: (1,)  -- PyTorch Linear(out_dim, 1); b2 cancels in the
                             softmax and is never shipped to the kernel.
    mxu_dtype: optional dtype for the MXU operands (e.g. jnp.bfloat16 for a
               single-pass matmul even when the feature arrives as f32).
    Returns (sap_vec (N, H) feature-dtype, att_mask unchanged)."""
    N, T, H = feature.shape
    feat_dt = jnp.dtype(feature.dtype)
    mxu_dt = jnp.dtype(mxu_dtype) if mxu_dtype is not None else feat_dt
    if approx_recip is None:
        # Exact reciprocal on the all-f32 path (keeps the 1e-5 check tight);
        # EUP approximate reciprocal on low-precision paths (it's noise there).
        approx_recip = (feat_dt != jnp.dtype(jnp.float32)
                        or mxu_dt != jnp.dtype(jnp.float32))

    # Host-side prep: only the small operands are touched (the big feature
    # tensor is passed through untouched -- no pad, no reshape, no extra copy).
    mask2d = att_mask.astype(jnp.float32)
    w1t = jnp.transpose(w1).astype(mxu_dt)           # (H, H): x @ w1t == x @ W1.T
    b1row = b1.reshape(1, H).astype(jnp.float32)
    w2row = w2.reshape(1, H).astype(jnp.float32)

    b_blk = _choose_batch_block(N, T, H, feat_dt.itemsize)
    n_blocks = pl.cdiv(N, b_blk)

    # VMEM budget estimate (conservative: double-buffered weights) -> explicit
    # scoped-VMEM limit; v5e's default is only 16 MiB, v7x physical is 64 MiB.
    est = (2 * b_blk * _tile_bytes(T, H, feat_dt.itemsize)        # feature x2
           + 2 * _tile_bytes(b_blk, T, 4)                         # mask x2
           + 2 * _tile_bytes(b_blk, H, feat_dt.itemsize)          # out x2
           + 2 * (_tile_bytes(H, H, mxu_dt.itemsize)
                  + 2 * _tile_bytes(1, H, 4))                     # weights
           + 3 * b_blk * _tile_bytes(T, H, 4))                    # f32 h + temps
    vmem_limit = int(min(max((3 * est) // 2, 32 << 20), 96 << 20))

    args = (feature, mask2d, w1t, b1row, w2row)
    try:
        call = _build_sap_call(N, T, H, feat_dt, b_blk, n_blocks, vmem_limit,
                               single_buffer_weights, approx_recip)
        out = call(*args)
    except Exception:
        if not single_buffer_weights:
            raise
        # Fallback: some toolchains may reject single-buffered (Buffered(1))
        # operands -- retry with default double buffering.
        call = _build_sap_call(N, T, H, feat_dt, b_blk, n_blocks, vmem_limit,
                               False, approx_recip)
        out = call(*args)

    return out, att_mask


def reference_forward(feature, att_mask, w1, b1, w2, b2):
    """Pure-JAX f32 reference matching the PyTorch module (b2 included)."""
    h = jnp.tanh(jnp.einsum("nth,oh->nto", feature, w1) + b1)       # (N, T, H)
    logits = jnp.einsum("nth,oh->nto", h, w2)[..., 0] + b2[0]       # (N, T)
    logits = logits + att_mask
    att_w = jax.nn.softmax(logits, axis=1)[..., None]               # (N, T, 1)
    return jnp.sum(h * att_w, axis=1)                               # (N, H)


if __name__ == "__main__":
    N, T, H = 2, 8, 32  # batch, seq length, hidden (out_dim)

    key = jax.random.PRNGKey(0)
    k_feat, k_mask, k_w1, k_b1, k_w2, k_b2 = jax.random.split(key, 6)

    feature = jax.random.normal(k_feat, (N, T, H), dtype=jnp.float32)
    # additive attention mask (0 = keep, large-negative = pad)
    att_mask = jnp.where(
        jax.random.uniform(k_mask, (N, T)) > 0.25, 0.0, -1e4
    ).astype(jnp.float32)

    bound1 = 1.0 / (H ** 0.5)
    w1 = jax.random.uniform(k_w1, (H, H), minval=-bound1, maxval=bound1,
                            dtype=jnp.float32)
    b1 = jax.random.uniform(k_b1, (H,), minval=-bound1, maxval=bound1,
                            dtype=jnp.float32)
    w2 = jax.random.uniform(k_w2, (1, H), minval=-bound1, maxval=bound1,
                            dtype=jnp.float32)
    b2 = jax.random.uniform(k_b2, (1,), minval=-bound1, maxval=bound1,
                            dtype=jnp.float32)

    ref = reference_forward(feature, att_mask, w1, b1, w2, b2)

    # --- f32 path (native dtype MXU operands, exact reciprocal): tight check.
    sap_vec, mask_out = sap_forward(feature, att_mask, w1, b1, w2, b2)
    sap_vec = jax.block_until_ready(sap_vec)
    assert sap_vec.shape == (N, H), sap_vec.shape
    assert mask_out.shape == (N, T), mask_out.shape
    assert jnp.allclose(sap_vec, ref, atol=1e-5, rtol=1e-5), (
        f"f32 max abs err {jnp.max(jnp.abs(sap_vec - ref))}"
    )

    # --- low-precision MXU path (review item 1): bf16 matmul operands via the
    # in-kernel cast + approximate (EUP) reciprocal; loose tolerance vs. the
    # f32 reference.
    sap_bf16, _ = sap_forward(feature, att_mask, w1, b1, w2, b2,
                              mxu_dtype=jnp.bfloat16)
    sap_bf16 = jax.block_until_ready(sap_bf16)
    assert jnp.allclose(sap_bf16.astype(jnp.float32), ref,
                        atol=6e-2, rtol=6e-2), (
        f"bf16 max abs err {jnp.max(jnp.abs(sap_bf16.astype(jnp.float32) - ref))}"
    )

    print("KERNEL_OK")
</pallas_src>

<mosaic_0001>
module attributes {stable_mosaic.version = 11 : i64} {
  func.func @sap_kernel(%arg0: i32, %arg1: memref<2x8x32xf32, #tpu.memory_space<vmem>>, %arg2: memref<2x8xf32, #tpu.memory_space<vmem>>, %arg3: memref<32x32xf32, #tpu.memory_space<vmem>>, %arg4: memref<1x32xf32, #tpu.memory_space<vmem>>, %arg5: memref<1x32xf32, #tpu.memory_space<vmem>>, %arg6: memref<2x32xf32, #tpu.memory_space<vmem>>) attributes {dimension_semantics = [#tpu.dimension_semantics<parallel>], iteration_bounds = array<i64: 1>, scalar_prefetch = 0 : i64, scratch_operands = 0 : i64, tpu.core_type = #tpu.core_type<tc>, window_params = [{transform_indices = @transform_0, window_bounds = array<i64: 2, 8, 32>}, {transform_indices = @transform_1, window_bounds = array<i64: 2, 8>}, {pipeline_mode = #tpu.pipeline_mode<synchronous>, transform_indices = @transform_2, window_bounds = array<i64: 32, 32>}, {pipeline_mode = #tpu.pipeline_mode<synchronous>, transform_indices = @transform_3, window_bounds = array<i64: 1, 32>}, {pipeline_mode = #tpu.pipeline_mode<synchronous>, transform_indices = @transform_4, window_bounds = array<i64: 1, 32>}, {transform_indices = @transform_5, window_bounds = array<i64: 2, 32>}]} {
    %c0 = arith.constant 0 : index
    %c0_0 = arith.constant 0 : index
    %c0_1 = arith.constant 0 : index
    %0 = vector.load %arg1[%c0, %c0_0, %c0_1] : memref<2x8x32xf32, #tpu.memory_space<vmem>>, vector<2x8x32xf32>
    %1 = vector.shape_cast %0 : vector<2x8x32xf32> to vector<16x32xf32>
    %c0_2 = arith.constant 0 : index
    %c0_3 = arith.constant 0 : index
    %2 = vector.load %arg3[%c0_2, %c0_3] : memref<32x32xf32, #tpu.memory_space<vmem>>, vector<32x32xf32>
    %cst = arith.constant dense<0.000000e+00> : vector<16x32xf32>
    %3 = tpu.matmul %1, %2, %cst {dimension_numbers = #tpu.dot_dimension_numbers<[1], [0], [0], [1], [0, 0, 1, 1], [], []>} : vector<16x32xf32>, vector<32x32xf32>, vector<16x32xf32> -> vector<16x32xf32>
    %c0_4 = arith.constant 0 : index
    %c0_5 = arith.constant 0 : index
    %4 = vector.load %arg4[%c0_4, %c0_5] : memref<1x32xf32, #tpu.memory_space<vmem>>, vector<1x32xf32>
    %5 = vector.broadcast %4 : vector<1x32xf32> to vector<16x32xf32>
    %6 = arith.addf %3, %5 : vector<16x32xf32>
    %7 = math.tanh %6 : vector<16x32xf32>
    %8 = vector.shape_cast %7 : vector<16x32xf32> to vector<2x8x32xf32>
    %c0_6 = arith.constant 0 : index
    %c0_7 = arith.constant 0 : index
    %9 = vector.load %arg5[%c0_6, %c0_7] : memref<1x32xf32, #tpu.memory_space<vmem>>, vector<1x32xf32>
    %10 = vector.shape_cast %9 : vector<1x32xf32> to vector<1x1x32xf32>
    %11 = vector.broadcast %10 : vector<1x1x32xf32> to vector<2x8x32xf32>
    %12 = arith.mulf %8, %11 : vector<2x8x32xf32>
    %cst_8 = arith.constant dense<0.000000e+00> : vector<2x8xf32>
    %13 = vector.multi_reduction <add>, %12, %cst_8 [2] : vector<2x8x32xf32> to vector<2x8xf32>
    %c0_9 = arith.constant 0 : index
    %c0_10 = arith.constant 0 : index
    %14 = vector.load %arg2[%c0_9, %c0_10] : memref<2x8xf32, #tpu.memory_space<vmem>>, vector<2x8xf32>
    %15 = arith.addf %13, %14 : vector<2x8xf32>
    %cst_11 = arith.constant dense<0xFF800000> : vector<2xf32>
    %16 = vector.multi_reduction <maximumf>, %15, %cst_11 [1] : vector<2x8xf32> to vector<2xf32>
    %17 = vector.shape_cast %16 : vector<2xf32> to vector<2x1xf32>
    %18 = vector.broadcast %17 : vector<2x1xf32> to vector<2x8xf32>
    %19 = arith.subf %15, %18 : vector<2x8xf32>
    %20 = math.exp %19 : vector<2x8xf32>
    %cst_12 = arith.constant dense<0.000000e+00> : vector<2xf32>
    %21 = vector.multi_reduction <add>, %20, %cst_12 [1] : vector<2x8xf32> to vector<2xf32>
    %22 = vector.shape_cast %21 : vector<2xf32> to vector<2x1xf32>
    %23 = vector.shape_cast %20 : vector<2x8xf32> to vector<2x8x1xf32>
    %24 = vector.broadcast %23 : vector<2x8x1xf32> to vector<2x8x32xf32>
    %25 = arith.mulf %8, %24 : vector<2x8x32xf32>
    %cst_13 = arith.constant dense<0.000000e+00> : vector<2x32xf32>
    %26 = vector.multi_reduction <add>, %25, %cst_13 [1] : vector<2x8x32xf32> to vector<2x32xf32>
    %27 = tpu.reciprocal %22 : vector<2x1xf32> -> vector<2x1xf32>
    %28 = vector.broadcast %27 : vector<2x1xf32> to vector<2x32xf32>
    %29 = arith.mulf %26, %28 : vector<2x32xf32>
    %c0_14 = arith.constant 0 : index
    %c0_15 = arith.constant 0 : index
    %30 = vector.load %arg6[%c0_14, %c0_15] : memref<2x32xf32, #tpu.memory_space<vmem>>, vector<2x32xf32>
    tpu.vector_store %arg6[%c0_14, %c0_15], %29 {strides = array<i32>} : memref<2x32xf32, #tpu.memory_space<vmem>>, vector<2x32xf32>,
    return
  }
  func.func @transform_0(%arg0: i32) -> (i32, i32, i32) {
    %c0_i32 = arith.constant 0 : i32
    %c0_i32_0 = arith.constant 0 : i32
    %c0_i32_1 = arith.constant 0 : i32
    return %arg0, %c0_i32, %c0_i32_0 : i32, i32, i32
  }
  func.func @transform_1(%arg0: i32) -> (i32, i32) {
    %c0_i32 = arith.constant 0 : i32
    %c0_i32_0 = arith.constant 0 : i32
    return %arg0, %c0_i32 : i32, i32
  }
  func.func @transform_2(%arg0: i32) -> (i32, i32) {
    %c0_i32 = arith.constant 0 : i32
    %c0_i32_0 = arith.constant 0 : i32
    %c0_i32_1 = arith.constant 0 : i32
    return %c0_i32, %c0_i32_0 : i32, i32
  }
  func.func @transform_3(%arg0: i32) -> (i32, i32) {
    %c0_i32 = arith.constant 0 : i32
    %c0_i32_0 = arith.constant 0 : i32
    %c0_i32_1 = arith.constant 0 : i32
    return %c0_i32, %c0_i32_0 : i32, i32
  }
  func.func @transform_4(%arg0: i32) -> (i32, i32) {
    %c0_i32 = arith.constant 0 : i32
    %c0_i32_0 = arith.constant 0 : i32
    %c0_i32_1 = arith.constant 0 : i32
    return %c0_i32, %c0_i32_0 : i32, i32
  }
  func.func @transform_5(%arg0: i32) -> (i32, i32) {
    %c0_i32 = arith.constant 0 : i32
    %c0_i32_0 = arith.constant 0 : i32
    return %arg0, %c0_i32 : i32, i32
  }
}

module attributes {stable_mosaic.version = 11 : i64} {
  func.func @sap_kernel(%arg0: i32, %arg1: memref<2x8x32xf32, #tpu.memory_space<vmem>>, %arg2: memref<2x8xf32, #tpu.memory_space<vmem>>, %arg3: memref<32x32xf32, #tpu.memory_space<vmem>>, %arg4: memref<1x32xf32, #tpu.memory_space<vmem>>, %arg5: memref<1x32xf32, #tpu.memory_space<vmem>>, %arg6: memref<2x32xf32, #tpu.memory_space<vmem>>) attributes {dimension_semantics = [#tpu.dimension_semantics<parallel>], iteration_bounds = array<i64: 1>, scalar_prefetch = 0 : i64, scratch_operands = 0 : i64, tpu.core_type = #tpu.core_type<tc>, window_params = [{transform_indices = @transform_0, window_bounds = array<i64: 2, 8, 32>}, {transform_indices = @transform_1, window_bounds = array<i64: 2, 8>}, {pipeline_mode = #tpu.pipeline_mode<synchronous>, transform_indices = @transform_2, window_bounds = array<i64: 32, 32>}, {pipeline_mode = #tpu.pipeline_mode<synchronous>, transform_indices = @transform_3, window_bounds = array<i64: 1, 32>}, {pipeline_mode = #tpu.pipeline_mode<synchronous>, transform_indices = @transform_4, window_bounds = array<i64: 1, 32>}, {transform_indices = @transform_5, window_bounds = array<i64: 2, 32>}]} {
    %c0 = arith.constant 0 : index
    %c0_0 = arith.constant 0 : index
    %c0_1 = arith.constant 0 : index
    %0 = vector.load %arg1[%c0, %c0_0, %c0_1] : memref<2x8x32xf32, #tpu.memory_space<vmem>>, vector<2x8x32xf32>
    %1 = vector.shape_cast %0 : vector<2x8x32xf32> to vector<16x32xf32>
    %c0_2 = arith.constant 0 : index
    %c0_3 = arith.constant 0 : index
    %2 = vector.load %arg3[%c0_2, %c0_3] : memref<32x32xf32, #tpu.memory_space<vmem>>, vector<32x32xf32>
    %cst = arith.constant dense<0.000000e+00> : vector<16x32xf32>
    %3 = tpu.matmul %1, %2, %cst {dimension_numbers = #tpu.dot_dimension_numbers<[1], [0], [0], [1], [0, 0, 1, 1], [], []>} : vector<16x32xf32>, vector<32x32xf32>, vector<16x32xf32> -> vector<16x32xf32>
    %c0_4 = arith.constant 0 : index
    %c0_5 = arith.constant 0 : index
    %4 = vector.load %arg4[%c0_4, %c0_5] : memref<1x32xf32, #tpu.memory_space<vmem>>, vector<1x32xf32>
    %5 = vector.broadcast %4 : vector<1x32xf32> to vector<16x32xf32>
    %6 = arith.addf %3, %5 : vector<16x32xf32>
    %7 = math.tanh %6 : vector<16x32xf32>
    %8 = vector.shape_cast %7 : vector<16x32xf32> to vector<2x8x32xf32>
    %c0_6 = arith.constant 0 : index
    %c0_7 = arith.constant 0 : index
    %9 = vector.load %arg5[%c0_6, %c0_7] : memref<1x32xf32, #tpu.memory_space<vmem>>, vector<1x32xf32>
    %10 = vector.shape_cast %9 : vector<1x32xf32> to vector<1x1x32xf32>
    %11 = vector.broadcast %10 : vector<1x1x32xf32> to vector<2x8x32xf32>
    %12 = arith.mulf %8, %11 : vector<2x8x32xf32>
    %cst_8 = arith.constant dense<0.000000e+00> : vector<2x8xf32>
    %13 = vector.multi_reduction <add>, %12, %cst_8 [2] : vector<2x8x32xf32> to vector<2x8xf32>
    %c0_9 = arith.constant 0 : index
    %c0_10 = arith.constant 0 : index
    %14 = vector.load %arg2[%c0_9, %c0_10] : memref<2x8xf32, #tpu.memory_space<vmem>>, vector<2x8xf32>
    %15 = arith.addf %13, %14 : vector<2x8xf32>
    %cst_11 = arith.constant dense<0xFF800000> : vector<2xf32>
    %16 = vector.multi_reduction <maximumf>, %15, %cst_11 [1] : vector<2x8xf32> to vector<2xf32>
    %17 = vector.shape_cast %16 : vector<2xf32> to vector<2x1xf32>
    %18 = vector.broadcast %17 : vector<2x1xf32> to vector<2x8xf32>
    %19 = arith.subf %15, %18 : vector<2x8xf32>
    %20 = math.exp %19 : vector<2x8xf32>
    %cst_12 = arith.constant dense<0.000000e+00> : vector<2xf32>
    %21 = vector.multi_reduction <add>, %20, %cst_12 [1] : vector<2x8xf32> to vector<2xf32>
    %22 = vector.shape_cast %21 : vector<2xf32> to vector<2x1xf32>
    %23 = vector.shape_cast %20 : vector<2x8xf32> to vector<2x8x1xf32>
    %24 = vector.broadcast %23 : vector<2x8x1xf32> to vector<2x8x32xf32>
    %25 = arith.mulf %8, %24 : vector<2x8x32xf32>
    %cst_13 = arith.constant dense<0.000000e+00> : vector<2x32xf32>
    %26 = vector.multi_reduction <add>, %25, %cst_13 [1] : vector<2x8x32xf32> to vector<2x32xf32>
    %27 = tpu.reciprocal %22 : vector<2x1xf32> -> vector<2x1xf32>
    %28 = vector.broadcast %27 : vector<2x1xf32> to vector<2x32xf32>
    %29 = arith.mulf %26, %28 : vector<2x32xf32>
    %c0_14 = arith.constant 0 : index
    %c0_15 = arith.constant 0 : index
    %30 = vector.load %arg6[%c0_14, %c0_15] : memref<2x32xf32, #tpu.memory_space<vmem>>, vector<2x32xf32>
    tpu.vector_store %arg6[%c0_14, %c0_15], %29 {strides = array<i32>} : memref<2x32xf32, #tpu.memory_space<vmem>>, vector<2x32xf32>,
    return
  }
  func.func @transform_0(%arg0: i32) -> (i32, i32, i32) {
    %c0_i32 = arith.constant 0 : i32
    %c0_i32_0 = arith.constant 0 : i32
    %c0_i32_1 = arith.constant 0 : i32
    return %arg0, %c0_i32, %c0_i32_0 : i32, i32, i32
  }
  func.func @transform_1(%arg0: i32) -> (i32, i32) {
    %c0_i32 = arith.constant 0 : i32
    %c0_i32_0 = arith.constant 0 : i32
    return %arg0, %c0_i32 : i32, i32
  }
  func.func @transform_2(%arg0: i32) -> (i32, i32) {
    %c0_i32 = arith.constant 0 : i32
    %c0_i32_0 = arith.constant 0 : i32
    %c0_i32_1 = arith.constant 0 : i32
    return %c0_i32, %c0_i32_0 : i32, i32
  }
  func.func @transform_3(%arg0: i32) -> (i32, i32) {
    %c0_i32 = arith.constant 0 : i32
    %c0_i32_0 = arith.constant 0 : i32
    %c0_i32_1 = arith.constant 0 : i32
    return %c0_i32, %c0_i32_0 : i32, i32
  }
  func.func @transform_4(%arg0: i32) -> (i32, i32) {
    %c0_i32 = arith.constant 0 : i32
    %c0_i32_0 = arith.constant 0 : i32
    %c0_i32_1 = arith.constant 0 : i32
    return %c0_i32, %c0_i32_0 : i32, i32
  }
  func.func @transform_5(%arg0: i32) -> (i32, i32) {
    %c0_i32 = arith.constant 0 : i32
    %c0_i32_0 = arith.constant 0 : i32
    return %arg0, %c0_i32 : i32, i32
  }
}

</mosaic_0001>

<bundles_post_ra>
// kernel: tpu_custom_call.1
= control target key start
LH: loop header
LB: loop body
LE: loop exit
PB: predicated region body
PF: predicated region fallthrough
CT: control target
= control target key end

     0   :  { %10 = vsyncpa [#allocation3], 0  ;;  %s445_s0 = inlined_call_operand.hbm [shape: f32[2,8,32], index: 0, kind: input, shape index: {}]   ;;  %s446_s1 = inlined_call_operand.hbm [shape: f32[2,8], index: 1, kind: input, shape index: {}]   ;;  %s447_s2 = inlined_call_operand.hbm [shape: f32[32,32], index: 2, kind: input, shape index: {}]   ;;  %s448_s3 = inlined_call_operand.vmem [shape: f32[1,32], index: 3, kind: input, shape index: {}]   ;;  %s449_s4 = inlined_call_operand.vmem [shape: f32[1,32], index: 4, kind: input, shape index: {}]   ;;  %s450_s5 = inlined_call_operand.hbm [shape: f32[2,32], index: 5, kind: output, shape index: {}]  }
   0x1   :  { %11 = vsyncpa [#allocation6], 0  ;;  %s31_s20 = sshll.u32 %s446_s1, 4  ;;  %s32_s20 = int_to_ptr.hbm [resolvable:$true] %s31_s20 }
   0x2   :  { %12 = vsyncpa [#allocation4], 0  ;;  %s379_s21 = smov [#allocation5]   ;;  %s17_s25 = sshll.u32 %s445_s0, 4  ;;  %s18_s25 = int_to_ptr.hbm [resolvable:$true] %s17_s25 }
   0x3   :  { %s33_s22 = sshll.u32 %s379_s21, 4  ;;  %s380_s26 = smov [#allocation2]   ;;  %s34_s22 = int_to_ptr.vmem [resolvable:$true] %s33_s22 }
   0x4   :  { %36 = dma.hbm_to_vmem [thread:$0]  %s32_s20, 32, %s34_s22, [#allocation6]  }
   0x5   :  { %s19_s27 = sshll.u32 %s380_s26, 4  ;;  %s381_s28 = smov 128   ;;  %s20_s27 = int_to_ptr.vmem [resolvable:$true] %s19_s27 }
   0x6   :  { %s382_s29 = smov 8   ;;  %s41_s1 = sshll.u32 %s447_s2, 4  ;;  %s42_s1 = int_to_ptr.hbm [resolvable:$true] %s41_s1 }
   0x7   :  { %25 = dma.hbm_to_vmem [thread:$0]  %s18_s25, 256, %s20_s27, [#allocation3], %s381_s28, %s381_s28, %s382_s29  }
   0x8   :  { %s383_s7 = smov [#allocation7]  }
   0x9   :  { %s43_s8 = sshll.u32 %s383_s7, 4  ;;  %s44_s8 = int_to_ptr.vmem [resolvable:$true] %s43_s8 }
   0xa   :  { %49 = dma.hbm_to_vmem [thread:$0]  %s42_s1, 512, %s44_s8, [#allocation6], %s381_s28, %s381_s28, %s382_s29  }
   0xb   :  { %373 = dma.done.wait [#allocation3], 256  }
   0xc   :  { %374 = vsyncadd [#allocation3], 4294967040 }
   0xd   :  { %375 = dma.done.wait [#allocation6], 544  }
   0xe   :  { %376 = vsyncadd [#allocation6], 4294966752  ;;  %v123_v0 = vlaneseq  ;;  %v71_v2 = vld [vmem:[#allocation7 + $0x18] sm:$0xff]  ;;  %v70_v3 = vld [vmem:[#allocation7 + $0x10] sm:$0xff]  ;;  %vm76_vm0 = vcmask 261120   ;;  %v384_v23 = vmov 0  }
   0xf   :  { %95 = vmatpush.msra.mxu0 %v71_v2  ;;  %250 = vmatpush.msra.mxu1 %v71_v2  ;;  %v69_v4 = vld [vmem:[#allocation7 + $0x8] sm:$0xff]  ;;  %v68_v5 = vld [vmem:[#allocation7] sm:$0xff]  ;;  %v67_v7 = vld [vmem:[#allocation2 + $0x8] sm:$0xff]  ;;  %vm152_vm1 = vcmask 1041409   ;;  %vm155_vm2 = vcmask 58368   ;;  %s237_s13 = sshll.u32 %s450_s5, 4  ;;  %s238_s13 = int_to_ptr.hbm [resolvable:$true] %s237_s13 }
  0x10   :  { %v124_v1 = vshrl.u32 %v123_v0, 7  ;;  %v66_v6 = vld [vmem:[#allocation2] sm:$0xff]  ;;  %v120_v8 = vld [vmem:[#allocation5] sm:$0x3]  ;;  %262 = vset.pattern.permute.xlu2 %v384_v23  ;;  %264 = vset.pattern.permute.xlu0 %v384_v23  ;;  %v149_v31 = vand.u32 127, %v123_v0  ;;  %vm228_vm7 = vcmask 254976  }
  0x11   :  { %96 = vmatpush.msra.mxu0 %v70_v3  ;;  %251 = vmatpush.msra.mxu1 %v70_v3  ;;  %v122_v9 = vperm.slane %v120_v8, 0  ;;  %v129_v10 = vperm.slane %v120_v8, 1  ;;  %v265_v11 = vld [vmem:[%s448_s3] ss:$0 sm:$0xff]  ;;  %s385_s3 = smov [#allocation8]  }
  0x12   :  { %261 = vset.pattern.permute.xlu1 %v124_v1  ;;  %v266_v16 = vld [vmem:[%s449_s4] ss:$0 sm:$0xff]  ;;  %s235_s4 = sshll.u32 %s385_s3, 4  ;;  %s236_s4 = int_to_ptr.vmem [resolvable:$true] %s235_s4 }
  0x13   :  { %97 = vmatpush.msra.mxu0 %v69_v4  ;;  %252 = vmatpush.msra.mxu1 %v69_v4 }
  0x15   :  { %98 = vmatpush.msra.mxu0 %v68_v5  ;;  %253 = vmatpush.msra.mxu1 %v68_v5 }
  0x16   :  { %248 = vmatmul.msk.f32.vlgmr.msra.gmra.mxu0 %vm76_vm0, %v66_v6  ;;  %249 = vmatmul.msk.f32.vlgmr.msra.gmra.mxu1 %vm76_vm0, %v67_v7 }
  0x1a   :  { %127 = vperm.xlu1 %261, %v122_v9  }
  0x22   :  { %134 = vperm.xlu1 %261, %v129_v10  }
  0x2a   :  { %263 = vset.pattern.permute.xlu1 %v384_v23 }
  0x8c   :  { %v128_v24 = vpop.permute.xlu1 %127 }
  0x93   :  { %v100_v12 = vpop.f32.mrf.mxu0  ;;  %v103_v13 = vpop.f32.mrf.mxu1 }
  0x94   :  { %v101_v14 = vadd.f32 %v265_v11, %v100_v12  ;;  %v104_v15 = vadd.f32 %v265_v11, %v103_v13  ;;  %v135_v27 = vpop.permute.xlu1 %134 }
  0x96   :  { %267 = vtanh.f32 %v101_v14 }
  0x97   :  { %269 = vtanh.f32 %v104_v15 }
  0x9c   :  { %v268_v17 = vpop.eup %267 }
  0x9d   :  { %v112_v18 = vmul.f32 %v268_v17, %v266_v16  ;;  %v270_v19 = vpop.eup %269 }
  0x9e   :  { %v113_v21 = vmul.f32 %v270_v19, %v266_v16 }
  0x9f   :  { %v114_v20 = vsel %vm76_vm0, %v112_v18, 0.0 }
  0xa0   :  { %115 = vadd.xlane.f32.xlu0 %v114_v20  ;;  %v117_v22 = vsel %vm76_vm0, %v113_v21, 0.0 }
  0xa8   :  { %118 = vadd.xlane.f32.xlu0 %v117_v22 }
 0x113   :  { %v116_v25 = vpop.xlane.xlu0 %115 }
 0x114   :  { %v138_v26 = vadd.f32 %v128_v24, %v116_v25 }
 0x116   :  { %143 = vperm.xlu2 %262, %v138_v26  }
 0x11b   :  { %v119_v28 = vpop.xlane.xlu0 %118 }
 0x11c   :  { %v139_v29 = vadd.f32 %v135_v27, %v119_v28 }
 0x11e   :  { %146 = vperm.xlu2 %262, %v139_v29  }
 0x170   :  { %v144_v30 = vpop.permute.xlu2 %143 }
 0x171   :  { %v150_v33 = vperm.slane %v144_v30, %v149_v31 }
 0x178   :  { %v147_v32 = vpop.permute.xlu2 %146 }
 0x179   :  { %v151_v34 = vperm.slane %v147_v32, %v149_v31 }
 0x17b   :  { %v153_v35 = vsel %vm152_vm1, %v151_v34, %v150_v33 }
 0x17c   :  { %v156_v36 = vsel %vm155_vm2, %v153_v35, -inf }
 0x17d   :  { %157 = vmax.xlane.f32.xlu0 %v156_v36 }
 0x1f0   :  { %v158_v37 = vpop.xlane.xlu0 %157 }
 0x1f1   :  { %v160_v38 = vperm.slane %v158_v37, 0  ;;  %v161_v39 = vperm.slane %v158_v37, 1 }
 0x1f3   :  { %v164_v40 = vsub.f32 %v138_v26, %v160_v38  ;;  %v165_v41 = vsub.f32 %v139_v29, %v161_v39 }
 0x1f5   :  { %v166_v42 = vmul.f32 1.442695, %v164_v40  ;;  %v168_v43 = vmul.f32 1.442695, %v165_v41 }
 0x1f7   :  { %271 = vpow2.f32 %v166_v42 }
 0x1f8   :  { %273 = vpow2.f32 %v168_v43 }
 0x1fd   :  { %v272_v44 = vpop.eup %271 }
 0x1fe   :  { %v274_v45 = vpop.eup %273  ;;  %173 = vperm.xlu1 %263, %v272_v44  }
 0x1ff   :  { %176 = vperm.xlu2 %262, %v274_v45  }
 0x259   :  { %v177_v46 = vpop.permute.xlu2 %176 }
 0x25a   :  { %v179_v48 = vperm.slane %v177_v46, %v149_v31  ;;  %v188_v52 = vmul.f32 %v270_v19, %v177_v46 }
 0x25c   :  { %v196_v54 = vsel %vm76_vm0, %v188_v52, 0.0 }
 0x25d   :  { %v197_v56 = vrot.slane %v196_v54, 4 }
 0x25f   :  { %v198_v59 = vadd.f32 %v197_v56, %v196_v54 }
 0x261   :  { %v199_v61 = vrot.slane %v198_v59, 2 }
 0x263   :  { %v200_v1 = vadd.f32 %v199_v61, %v198_v59 }
 0x265   :  { %v201_v7 = vrot.slane %v200_v1, 1 }
 0x267   :  { %v202_v13 = vadd.f32 %v201_v7, %v200_v1 }
 0x270   :  { %v174_v47 = vpop.permute.xlu1 %173 }
 0x271   :  { %v178_v49 = vperm.slane %v174_v47, %v149_v31  ;;  %v187_v53 = vmul.f32 %v268_v17, %v174_v47 }
 0x273   :  { %v180_v50 = vsel %vm152_vm1, %v179_v48, %v178_v49  ;;  %v189_v55 = vsel %vm76_vm0, %v187_v53, 0.0 }
 0x274   :  { %v182_v51 = vsel %vm155_vm2, %v180_v50, 0.0  ;;  %v190_v57 = vrot.slane %v189_v55, 4 }
 0x275   :  { %183 = vadd.xlane.f32.xlu0 %v182_v51 }
 0x276   :  { %v191_v60 = vadd.f32 %v190_v57, %v189_v55 }
 0x278   :  { %v192_v63 = vrot.slane %v191_v60, 2 }
 0x27a   :  { %v193_v4 = vadd.f32 %v192_v63, %v191_v60 }
 0x27c   :  { %v194_v10 = vrot.slane %v193_v4, 1 }
 0x27e   :  { %v195_v15 = vadd.f32 %v194_v10, %v193_v4 }
 0x2e8   :  { %v184_v58 = vpop.xlane.xlu0 %183 }
 0x2e9   :  { %275 = vrcp.f32 %v184_v58  ;;  %v214_v3 = vand.u32 2147483648, %v184_v58  ;;  %v212_v6 = vand.u32 2147483647, %v184_v58  ;;  %vm208_vm4 = vweird.f32 %v184_v58 }
 0x2eb   :  { %v215_v9 = vor.u32 1.1754944e-38, %v214_v3  ;;  %vm213_vm6 = vcmp.eq.f32.partialorder %v212_v6, 8.507059e+37 }
 0x2ef   :  { %v276_v62 = vpop.eup %275 }
 0x2f0   :  { %v204_v0 = vmul.f32 %v276_v62, %v184_v58  ;;  %vm209_vm3 = vweird.f32 %v276_v62 }
 0x2f1   :  { %vm210_vm5 = vmor %vm208_vm4, %vm209_vm3 }
 0x2f2   :  { %v205_v2 = vsub.f32 1.0, %v204_v0 }
 0x2f4   :  { %v206_v5 = vmul.f32 %v276_v62, %v205_v2 }
 0x2f6   :  { %v207_v8 = vadd.f32 %v276_v62, %v206_v5 }
 0x2f8   :  { %v211_v11 = vsel %vm210_vm5, %v276_v62, %v207_v8 }
 0x2f9   :  { %v216_v12 = vsel %vm213_vm6, %v215_v9, %v211_v11 }
 0x2fa   :  { %v218_v14 = vrot.slane %v216_v12, 1  ;;  %v221_v17 = vmul.f32 %v216_v12, %v195_v15 }
 0x2fc   :  { %v222_v16 = vmul.f32 %v218_v14, %v202_v13 }
 0x2fe   :  { %v225_v18 = vrot.slane %v222_v16, 7 }
 0x300   :  { %v226_v19 = vsel %vm152_vm1, %v225_v18, %v221_v17 }
 0x301   :  { %229 = vst.msk [vmem:[#allocation8] sm:$0x3] %vm228_vm7, %v226_v19 }
 0x302   :  { %240 = dma.vmem_to_hbm [thread:$0]  %s236_s4, 32, %s238_s13, [#allocation4]  }
 0x303   :  { %377 = dma.done.wait [#allocation4], 32  }
 0x304   :  { %378 = vsyncadd [#allocation4], 4294967264 }
 0x305   :  { %245 = vsyncpa [#allocation3], 1 }
 0x306   :  { %246 = vsyncpa [#allocation6], 1 }
 0x307   :  { %247 = vsyncpa [#allocation4], 1 }

// kernel: tpu_custom_call.1
= control target key start
LH: loop header
LB: loop body
LE: loop exit
PB: predicated region body
PF: predicated region fallthrough
CT: control target
= control target key end

     0   :  { %10 = vsyncpa [#allocation3], 0  ;;  %s445_s0 = inlined_call_operand.hbm [shape: f32[2,8,32], index: 0, kind: input, shape index: {}]   ;;  %s446_s1 = inlined_call_operand.hbm [shape: f32[2,8], index: 1, kind: input, shape index: {}]   ;;  %s447_s2 = inlined_call_operand.hbm [shape: f32[32,32], index: 2, kind: input, shape index: {}]   ;;  %s448_s3 = inlined_call_operand.vmem [shape: f32[1,32], index: 3, kind: input, shape index: {}]   ;;  %s449_s4 = inlined_call_operand.vmem [shape: f32[1,32], index: 4, kind: input, shape index: {}]   ;;  %s450_s5 = inlined_call_operand.hbm [shape: f32[2,32], index: 5, kind: output, shape index: {}]  }
   0x1   :  { %11 = vsyncpa [#allocation6], 0  ;;  %s31_s20 = sshll.u32 %s446_s1, 4  ;;  %s32_s20 = int_to_ptr.hbm [resolvable:$true] %s31_s20 }
   0x2   :  { %12 = vsyncpa [#allocation4], 0  ;;  %s379_s21 = smov [#allocation5]   ;;  %s17_s25 = sshll.u32 %s445_s0, 4  ;;  %s18_s25 = int_to_ptr.hbm [resolvable:$true] %s17_s25 }
   0x3   :  { %s33_s22 = sshll.u32 %s379_s21, 4  ;;  %s380_s26 = smov [#allocation2]   ;;  %s34_s22 = int_to_ptr.vmem [resolvable:$true] %s33_s22 }
   0x4   :  { %36 = dma.hbm_to_vmem [thread:$0]  %s32_s20, 32, %s34_s22, [#allocation6]  }
   0x5   :  { %s19_s27 = sshll.u32 %s380_s26, 4  ;;  %s381_s28 = smov 128   ;;  %s20_s27 = int_to_ptr.vmem [resolvable:$true] %s19_s27 }
   0x6   :  { %s382_s29 = smov 8   ;;  %s41_s1 = sshll.u32 %s447_s2, 4  ;;  %s42_s1 = int_to_ptr.hbm [resolvable:$true] %s41_s1 }
   0x7   :  { %25 = dma.hbm_to_vmem [thread:$0]  %s18_s25, 256, %s20_s27, [#allocation3], %s381_s28, %s381_s28, %s382_s29  }
   0x8   :  { %s383_s7 = smov [#allocation7]  }
   0x9   :  { %s43_s8 = sshll.u32 %s383_s7, 4  ;;  %s44_s8 = int_to_ptr.vmem [resolvable:$true] %s43_s8 }
   0xa   :  { %49 = dma.hbm_to_vmem [thread:$0]  %s42_s1, 512, %s44_s8, [#allocation6], %s381_s28, %s381_s28, %s382_s29  }
   0xb   :  { %373 = dma.done.wait [#allocation3], 256  }
   0xc   :  { %374 = vsyncadd [#allocation3], 4294967040 }
   0xd   :  { %375 = dma.done.wait [#allocation6], 544  }
   0xe   :  { %376 = vsyncadd [#allocation6], 4294966752  ;;  %v123_v0 = vlaneseq  ;;  %v71_v2 = vld [vmem:[#allocation7 + $0x18] sm:$0xff]  ;;  %v70_v3 = vld [vmem:[#allocation7 + $0x10] sm:$0xff]  ;;  %vm76_vm0 = vcmask 261120   ;;  %v384_v23 = vmov 0  }
   0xf   :  { %95 = vmatpush.msra.mxu0 %v71_v2  ;;  %250 = vmatpush.msra.mxu1 %v71_v2  ;;  %v69_v4 = vld [vmem:[#allocation7 + $0x8] sm:$0xff]  ;;  %v68_v5 = vld [vmem:[#allocation7] sm:$0xff]  ;;  %v67_v7 = vld [vmem:[#allocation2 + $0x8] sm:$0xff]  ;;  %vm152_vm1 = vcmask 1041409   ;;  %vm155_vm2 = vcmask 58368   ;;  %s237_s13 = sshll.u32 %s450_s5, 4  ;;  %s238_s13 = int_to_ptr.hbm [resolvable:$true] %s237_s13 }
  0x10   :  { %v124_v1 = vshrl.u32 %v123_v0, 7  ;;  %v66_v6 = vld [vmem:[#allocation2] sm:$0xff]  ;;  %v120_v8 = vld [vmem:[#allocation5] sm:$0x3]  ;;  %262 = vset.pattern.permute.xlu2 %v384_v23  ;;  %264 = vset.pattern.permute.xlu0 %v384_v23  ;;  %v149_v31 = vand.u32 127, %v123_v0  ;;  %vm228_vm7 = vcmask 254976  }
  0x11   :  { %96 = vmatpush.msra.mxu0 %v70_v3  ;;  %251 = vmatpush.msra.mxu1 %v70_v3  ;;  %v122_v9 = vperm.slane %v120_v8, 0  ;;  %v129_v10 = vperm.slane %v120_v8, 1  ;;  %v265_v11 = vld [vmem:[%s448_s3] ss:$0 sm:$0xff]  ;;  %s385_s3 = smov [#allocation8]  }
  0x12   :  { %261 = vset.pattern.permute.xlu1 %v124_v1  ;;  %v266_v16 = vld [vmem:[%s449_s4] ss:$0 sm:$0xff]  ;;  %s235_s4 = sshll.u32 %s385_s3, 4  ;;  %s236_s4 = int_to_ptr.vmem [resolvable:$true] %s235_s4 }
  0x13   :  { %97 = vmatpush.msra.mxu0 %v69_v4  ;;  %252 = vmatpush.msra.mxu1 %v69_v4 }
  0x15   :  { %98 = vmatpush.msra.mxu0 %v68_v5  ;;  %253 = vmatpush.msra.mxu1 %v68_v5 }
  0x16   :  { %248 = vmatmul.msk.f32.vlgmr.msra.gmra.mxu0 %vm76_vm0, %v66_v6  ;;  %249 = vmatmul.msk.f32.vlgmr.msra.gmra.mxu1 %vm76_vm0, %v67_v7 }
  0x1a   :  { %127 = vperm.xlu1 %261, %v122_v9  }
  0x22   :  { %134 = vperm.xlu1 %261, %v129_v10  }
  0x2a   :  { %263 = vset.pattern.permute.xlu1 %v384_v23 }
  0x8c   :  { %v128_v24 = vpop.permute.xlu1 %127 }
  0x93   :  { %v100_v12 = vpop.f32.mrf.mxu0  ;;  %v103_v13 = vpop.f32.mrf.mxu1 }
  0x94   :  { %v101_v14 = vadd.f32 %v265_v11, %v100_v12  ;;  %v104_v15 = vadd.f32 %v265_v11, %v103_v13  ;;  %v135_v27 = vpop.permute.xlu1 %134 }
  0x96   :  { %267 = vtanh.f32 %v101_v14 }
  0x97   :  { %269 = vtanh.f32 %v104_v15 }
  0x9c   :  { %v268_v17 = vpop.eup %267 }
  0x9d   :  { %v112_v18 = vmul.f32 %v268_v17, %v266_v16  ;;  %v270_v19 = vpop.eup %269 }
  0x9e   :  { %v113_v21 = vmul.f32 %v270_v19, %v266_v16 }
  0x9f   :  { %v114_v20 = vsel %vm76_vm0, %v112_v18, 0.0 }
  0xa0   :  { %115 = vadd.xlane.f32.xlu0 %v114_v20  ;;  %v117_v22 = vsel %vm76_vm0, %v113_v21, 0.0 }
  0xa8   :  { %118 = vadd.xlane.f32.xlu0 %v117_v22 }
 0x113   :  { %v116_v25 = vpop.xlane.xlu0 %115 }
 0x114   :  { %v138_v26 = vadd.f32 %v128_v24, %v116_v25 }
 0x116   :  { %143 = vperm.xlu2 %262, %v138_v26  }
 0x11b   :  { %v119_v28 = vpop.xlane.xlu0 %118 }
 0x11c   :  { %v139_v29 = vadd.f32 %v135_v27, %v119_v28 }
 0x11e   :  { %146 = vperm.xlu2 %262, %v139_v29  }
 0x170   :  { %v144_v30 = vpop.permute.xlu2 %143 }
 0x171   :  { %v150_v33 = vperm.slane %v144_v30, %v149_v31 }
 0x178   :  { %v147_v32 = vpop.permute.xlu2 %146 }
 0x179   :  { %v151_v34 = vperm.slane %v147_v32, %v149_v31 }
 0x17b   :  { %v153_v35 = vsel %vm152_vm1, %v151_v34, %v150_v33 }
 0x17c   :  { %v156_v36 = vsel %vm155_vm2, %v153_v35, -inf }
 0x17d   :  { %157 = vmax.xlane.f32.xlu0 %v156_v36 }
 0x1f0   :  { %v158_v37 = vpop.xlane.xlu0 %157 }
 0x1f1   :  { %v160_v38 = vperm.slane %v158_v37, 0  ;;  %v161_v39 = vperm.slane %v158_v37, 1 }
 0x1f3   :  { %v164_v40 = vsub.f32 %v138_v26, %v160_v38  ;;  %v165_v41 = vsub.f32 %v139_v29, %v161_v39 }
 0x1f5   :  { %v166_v42 = vmul.f32 1.442695, %v164_v40  ;;  %v168_v43 = vmul.f32 1.442695, %v165_v41 }
 0x1f7   :  { %271 = vpow2.f32 %v166_v42 }
 0x1f8   :  { %273 = vpow2.f32 %v168_v43 }
 0x1fd   :  { %v272_v44 = vpop.eup %271 }
 0x1fe   :  { %v274_v45 = vpop.eup %273  ;;  %173 = vperm.xlu1 %263, %v272_v44  }
 0x1ff   :  { %176 = vperm.xlu2 %262, %v274_v45  }
 0x259   :  { %v177_v46 = vpop.permute.xlu2 %176 }
 0x25a   :  { %v179_v48 = vperm.slane %v177_v46, %v149_v31  ;;  %v188_v52 = vmul.f32 %v270_v19, %v177_v46 }
 0x25c   :  { %v196_v54 = vsel %vm76_vm0, %v188_v52, 0.0 }
 0x25d   :  { %v197_v56 = vrot.slane %v196_v54, 4 }
 0x25f   :  { %v198_v59 = vadd.f32 %v197_v56, %v196_v54 }
 0x261   :  { %v199_v61 = vrot.slane %v198_v59, 2 }
 0x263   :  { %v200_v1 = vadd.f32 %v199_v61, %v198_v59 }
 0x265   :  { %v201_v7 = vrot.slane %v200_v1, 1 }
 0x267   :  { %v202_v13 = vadd.f32 %v201_v7, %v200_v1 }
 0x270   :  { %v174_v47 = vpop.permute.xlu1 %173 }
 0x271   :  { %v178_v49 = vperm.slane %v174_v47, %v149_v31  ;;  %v187_v53 = vmul.f32 %v268_v17, %v174_v47 }
 0x273   :  { %v180_v50 = vsel %vm152_vm1, %v179_v48, %v178_v49  ;;  %v189_v55 = vsel %vm76_vm0, %v187_v53, 0.0 }
 0x274   :  { %v182_v51 = vsel %vm155_vm2, %v180_v50, 0.0  ;;  %v190_v57 = vrot.slane %v189_v55, 4 }
 0x275   :  { %183 = vadd.xlane.f32.xlu0 %v182_v51 }
 0x276   :  { %v191_v60 = vadd.f32 %v190_v57, %v189_v55 }
 0x278   :  { %v192_v63 = vrot.slane %v191_v60, 2 }
 0x27a   :  { %v193_v4 = vadd.f32 %v192_v63, %v191_v60 }
 0x27c   :  { %v194_v10 = vrot.slane %v193_v4, 1 }
 0x27e   :  { %v195_v15 = vadd.f32 %v194_v10, %v193_v4 }
 0x2e8   :  { %v184_v58 = vpop.xlane.xlu0 %183 }
 0x2e9   :  { %275 = vrcp.f32 %v184_v58  ;;  %v214_v3 = vand.u32 2147483648, %v184_v58  ;;  %v212_v6 = vand.u32 2147483647, %v184_v58  ;;  %vm208_vm4 = vweird.f32 %v184_v58 }
 0x2eb   :  { %v215_v9 = vor.u32 1.1754944e-38, %v214_v3  ;;  %vm213_vm6 = vcmp.eq.f32.partialorder %v212_v6, 8.507059e+37 }
 0x2ef   :  { %v276_v62 = vpop.eup %275 }
 0x2f0   :  { %v204_v0 = vmul.f32 %v276_v62, %v184_v58  ;;  %vm209_vm3 = vweird.f32 %v276_v62 }
 0x2f1   :  { %vm210_vm5 = vmor %vm208_vm4, %vm209_vm3 }
 0x2f2   :  { %v205_v2 = vsub.f32 1.0, %v204_v0 }
 0x2f4   :  { %v206_v5 = vmul.f32 %v276_v62, %v205_v2 }
 0x2f6   :  { %v207_v8 = vadd.f32 %v276_v62, %v206_v5 }
 0x2f8   :  { %v211_v11 = vsel %vm210_vm5, %v276_v62, %v207_v8 }
 0x2f9   :  { %v216_v12 = vsel %vm213_vm6, %v215_v9, %v211_v11 }
 0x2fa   :  { %v218_v14 = vrot.slane %v216_v12, 1  ;;  %v221_v17 = vmul.f32 %v216_v12, %v195_v15 }
 0x2fc   :  { %v222_v16 = vmul.f32 %v218_v14, %v202_v13 }
 0x2fe   :  { %v225_v18 = vrot.slane %v222_v16, 7 }
 0x300   :  { %v226_v19 = vsel %vm152_vm1, %v225_v18, %v221_v17 }
 0x301   :  { %229 = vst.msk [vmem:[#allocation8] sm:$0x3] %vm228_vm7, %v226_v19 }
 0x302   :  { %240 = dma.vmem_to_hbm [thread:$0]  %s236_s4, 32, %s238_s13, [#allocation4]  }
 0x303   :  { %377 = dma.done.wait [#allocation4], 32  }
 0x304   :  { %378 = vsyncadd [#allocation4], 4294967264 }
 0x305   :  { %245 = vsyncpa [#allocation3], 1 }
 0x306   :  { %246 = vsyncpa [#allocation6], 1 }
 0x307   :  { %247 = vsyncpa [#allocation4], 1 }

</bundles_post_ra>
